<compile_context>
chip_gen: v7x
topology: tpu7x:2x2x1
jax: 0.10.0
libtpu: 0.0.40
codegen_flags: <defaults>
</compile_context>

<pallas_src>
import functools

import jax
import jax.numpy as jnp
from jax.experimental import pallas as pl
from jax.experimental.pallas import tpu as pltpu


def _preemphasis_kernel(x_ref, b_ref, o_ref, *, coef):
    # x_ref: (B, tile_t)     current time tile (VMEM, pipelined)
    # b_ref: (B, num_tiles)  boundary columns (VMEM-resident, fetched once)
    i = pl.program_id(0)

    # Boundary sample feeding lane 0 of this tile:
    #   tile 0   -> x[:, 1]               (reflect pad)
    #   tile i>0 -> x[:, i*tile_t - 1]    (last sample of the previous tile)
    # Select column i of the resident boundary block with iota-compare + lane
    # reduce (only num_tiles lanes; negligible).
    b = b_ref[...].astype(jnp.float32)                              # (B, NT)
    col = jax.lax.broadcasted_iota(jnp.int32, b.shape, 1)
    bcol = jnp.sum(jnp.where(col == i, b, 0.0), axis=1, keepdims=True)  # (B, 1)

    x = x_ref[...].astype(jnp.float32)                              # (B, tile_t)
    # prev[:, t] = x[:, t-1], with the cross-tile halo in lane 0.
    prev = jnp.concatenate([bcol, x[:, :-1]], axis=1)
    o_ref[...] = (x - coef * prev).astype(o_ref.dtype)


def _pick_tile_t(batch: int, t: int, dtype) -> int:
    """Largest lane-aligned time tile whose PADDED VMEM footprint is ~4 MiB."""
    itemsize = jnp.dtype(dtype).itemsize
    # Sub-32-bit dtypes pack along sublanes: native tile is (8*packing, 128).
    packing = max(1, 4 // itemsize)
    padded_rows = pl.cdiv(batch, 8 * packing) * (8 * packing)
    t128 = pl.cdiv(t, 128) * 128
    # ~4 MiB padded per block: x-in + out double-buffered -> ~16 MiB pipeline
    # buffers + in-kernel f32 temporaries, comfortably inside the vmem limit.
    budget_bytes = 4 * 1024 * 1024
    tile = budget_bytes // (padded_rows * itemsize)
    tile = max(128, (tile // 128) * 128)
    return min(tile, t128)


def preemphasis(x: jax.Array, coef: float = 0.97, *, tile_t: int | None = None):
    assert x.ndim == 2, "The number of dimensions of input tensor must be 2!"
    B, T = x.shape
    assert T >= 2, "reflect padding requires at least 2 samples"

    if tile_t is None:
        tile_t = _pick_tile_t(B, T, x.dtype)
    assert tile_t % 128 == 0
    num_tiles = pl.cdiv(T, tile_t)

    # boundary[b, j] = sample feeding lane 0 of tile j for row b:
    #   tile 0  : reflect pad -> x[b, 1]
    #   tile j>0: x[b, j*tile_t - 1]  (last sample of the previous tile)
    last_of_prev = x[:, tile_t - 1:(num_tiles - 1) * tile_t:tile_t]  # (B, nt-1)
    boundary = jnp.concatenate([x[:, 1:2], last_of_prev], axis=1)    # (B, nt)

    kernel = functools.partial(_preemphasis_kernel, coef=float(coef))
    itemsize = x.dtype.itemsize
    return pl.pallas_call(
        kernel,
        out_shape=jax.ShapeDtypeStruct((B, T), x.dtype),
        grid=(num_tiles,),
        in_specs=[
            pl.BlockSpec((B, tile_t), lambda i: (0, i)),
            # Constant index_map -> fetched once, stays resident in VMEM.
            pl.BlockSpec((B, num_tiles), lambda i: (0, 0)),
        ],
        out_specs=pl.BlockSpec((B, tile_t), lambda i: (0, i)),
        compiler_params=pltpu.CompilerParams(
            dimension_semantics=("parallel",),     # v7x: shard tiles over 2 TCs
            vmem_limit_bytes=48 * 1024 * 1024,     # < v7x 64 MiB physical
        ),
        cost_estimate=pl.CostEstimate(
            flops=2 * B * T,
            transcendentals=0,
            bytes_accessed=2 * B * T * itemsize,   # read x + write out
        ),
    )(x, boundary)


def preemphasis_ref(x: jax.Array, coef: float = 0.97) -> jax.Array:
    prev = jnp.concatenate([x[:, 1:2], x[:, :-1]], axis=1)
    return x - coef * prev


if __name__ == "__main__":
    key = jax.random.PRNGKey(0)
    k1, k2, k3 = jax.random.split(key, 3)

    # Small case matching the module's expected (batch, samples) input.
    B, T = 2, 128
    x = jax.random.normal(k1, (B, T), dtype=jnp.float32)
    out = jax.block_until_ready(preemphasis(x, coef=0.97))
    ref = preemphasis_ref(x, coef=0.97)
    assert out.shape == (B, T)
    assert out.dtype == x.dtype
    assert jnp.allclose(out, ref, atol=1e-6, rtol=1e-6)

    # Multi-tile case: exercises the cross-tile halo and a ragged last tile.
    x2 = jax.random.normal(k2, (2, 400), dtype=jnp.float32)
    out2 = jax.block_until_ready(preemphasis(x2, coef=0.97, tile_t=128))
    assert jnp.allclose(out2, preemphasis_ref(x2, 0.97), atol=1e-6, rtol=1e-6)

    # Odd batch, several tiles, ragged tail.
    x3 = jax.random.normal(k3, (3, 700), dtype=jnp.float32)
    out3 = jax.block_until_ready(preemphasis(x3, coef=0.97, tile_t=256))
    assert jnp.allclose(out3, preemphasis_ref(x3, 0.97), atol=1e-6, rtol=1e-6)

    print("KERNEL_OK")
</pallas_src>

<mosaic_0001>
module attributes {stable_mosaic.version = 11 : i64} {
  func.func @_preemphasis_kernel(%arg0: i32, %arg1: memref<2x128xf32, #tpu.memory_space<vmem>>, %arg2: memref<2x1xf32, #tpu.memory_space<vmem>>, %arg3: memref<2x128xf32, #tpu.memory_space<vmem>>) attributes {dimension_semantics = [#tpu.dimension_semantics<parallel>], iteration_bounds = array<i64: 1>, scalar_prefetch = 0 : i64, scratch_operands = 0 : i64, tpu.core_type = #tpu.core_type<tc>, window_params = [{transform_indices = @transform_0, window_bounds = array<i64: 2, 128>}, {pipeline_mode = #tpu.pipeline_mode<synchronous>, transform_indices = @transform_1, window_bounds = array<i64: 2, 1>}, {transform_indices = @transform_2, window_bounds = array<i64: 2, 128>}]} {
    %c0 = arith.constant 0 : index
    %c0_0 = arith.constant 0 : index
    %0 = vector.load %arg2[%c0, %c0_0] : memref<2x1xf32, #tpu.memory_space<vmem>>, vector<2x1xf32>
    %1 = tpu.iota {dimensions = array<i32: 1>} : vector<2x1xi32>
    %2 = vector.broadcast %arg0 : i32 to vector<2x1xi32>
    %3 = arith.cmpi eq, %1, %2 : vector<2x1xi32>
    %cst = arith.constant 0.000000e+00 : f32
    %4 = vector.broadcast %cst : f32 to vector<2x1xf32>
    %5 = arith.select %3, %0, %4 : vector<2x1xi1>, vector<2x1xf32>
    %cst_1 = arith.constant dense<0.000000e+00> : vector<2xf32>
    %6 = vector.multi_reduction <add>, %5, %cst_1 [1] : vector<2x1xf32> to vector<2xf32>
    %7 = vector.shape_cast %6 : vector<2xf32> to vector<2x1xf32>
    %c0_2 = arith.constant 0 : index
    %c0_3 = arith.constant 0 : index
    %8 = vector.load %arg1[%c0_2, %c0_3] : memref<2x128xf32, #tpu.memory_space<vmem>>, vector<2x128xf32>
    %9 = vector.extract_strided_slice %8 {offsets = [0, 0], sizes = [2, 127], strides = [1, 1]} : vector<2x128xf32> to vector<2x127xf32>
    %10 = tpu.concatenate %7, %9 in 1 : vector<2x1xf32>, vector<2x127xf32> -> vector<2x128xf32>
    %cst_4 = arith.constant 9.700000e-01 : f32
    %11 = vector.broadcast %cst_4 : f32 to vector<2x128xf32>
    %12 = arith.mulf %11, %10 : vector<2x128xf32>
    %13 = arith.subf %8, %12 : vector<2x128xf32>
    %c0_5 = arith.constant 0 : index
    %c0_6 = arith.constant 0 : index
    %14 = vector.load %arg3[%c0_5, %c0_6] : memref<2x128xf32, #tpu.memory_space<vmem>>, vector<2x128xf32>
    tpu.vector_store %arg3[%c0_5, %c0_6], %13 {strides = array<i32>} : memref<2x128xf32, #tpu.memory_space<vmem>>, vector<2x128xf32>,
    return
  }
  func.func @transform_0(%arg0: i32) -> (i32, i32) {
    %c0_i32 = arith.constant 0 : i32
    %c0_i32_0 = arith.constant 0 : i32
    return %c0_i32, %arg0 : i32, i32
  }
  func.func @transform_1(%arg0: i32) -> (i32, i32) {
    %c0_i32 = arith.constant 0 : i32
    %c0_i32_0 = arith.constant 0 : i32
    %c0_i32_1 = arith.constant 0 : i32
    return %c0_i32, %c0_i32_0 : i32, i32
  }
  func.func @transform_2(%arg0: i32) -> (i32, i32) {
    %c0_i32 = arith.constant 0 : i32
    %c0_i32_0 = arith.constant 0 : i32
    return %c0_i32, %arg0 : i32, i32
  }
}

</mosaic_0001>

<bundles_post_ra>
// kernel: tpu_custom_call.1
= control target key start
LH: loop header
LB: loop body
LE: loop exit
PB: predicated region body
PF: predicated region fallthrough
CT: control target
= control target key end

     0   :  { %s69_s11 = smov 1   ;;  %s104_s0 = inlined_call_operand.vmem [shape: f32[2,128], index: 0, kind: input, shape index: {}]   ;;  %s105_s1 = inlined_call_operand.vmem [shape: f32[2,1], index: 1, kind: input, shape index: {}]   ;;  %s106_s2 = inlined_call_operand.hbm [shape: f32[2,128], index: 2, kind: output, shape index: {}]  }
   0x1   :  { %v19_v0 = vld [vmem:[%s104_s0] sm:$0x3] }
   0x2   :  { %21 = vrot.lane.b32.xlu0 %v19_v0, %s69_s11 }
   0x3   :  { %7 = vsyncpa [#allocation3], 0  ;;  %v13_v1 = vlaneseq  ;;  %v12_v3 = vld [vmem:[%s105_s1] sm:$0x3]  ;;  %vm24_vm1 = vcmask 7168   ;;  %s70_s14 = smov [#allocation2]  }
   0x4   :  { %s35_s15 = sshll.u32 %s70_s14, 4  ;;  %s36_s15 = int_to_ptr.vmem [resolvable:$true] %s35_s15 }
   0x5   :  { %v14_v2 = vand.u32 127, %v13_v1  ;;  %s45_s0 = scalar_lea.vmem %s36_s15, 32  ;;  %p50_p1 = scmp.lt.s32.totalorder %s36_s15, %s36_s15 }
   0x6   :  { %p46_p0 = scmp.ne.s32.totalorder %s36_s15, %s45_s0  ;;  %p51_p2 = scmp.lt.s32.totalorder %s45_s0, %s45_s0 }
   0x7   :  { %vm16_vm0 = vcmp.eq.s32.totalorder %v14_v2, 0 }
   0x8   :  { %v17_v4 = vsel %vm16_vm0, %v12_v3, 0.0  ;;  %p52_p3 = por %p51_p2, %p50_p1 }
   0xa   :  { %p53_p4 = pnand %p52_p3, %p46_p0 }
  0x74   :  { %v22_v5 = vpop.permute.xlu0 %21 }
  0x75   :  { %v25_v6 = vsel %vm24_vm1, %v17_v4, %v22_v5 }
  0x76   :  { %v26_v7 = vmul.f32 0.97, %v25_v6 }
  0x78   :  { %v27_v8 = vsub.f32 %v19_v0, %v26_v7 }
  0x7a   :  { %28 = vst [vmem:[#allocation2] sm:$0x3] %v27_v8 }
  0x7b   :  { %56 = shalt.err (!%p53_p4)
}
  0x7c   :  { %s57_s17 = scalar_lea.hbm %s106_s2, 32 }
  0x7d   :  { %p58_p5 = scmp.ne.s32.totalorder %s106_s2, %s57_s17  ;;  %p61_p6 = scmp.lt.u32.totalorder %s57_s17, %s106_s2 }
  0x7f   :  { %p63_p7 = pnand %p61_p6, %p58_p5 }
  0x81   :  { %66 = shalt.err (!%p63_p7)
}
  0x82   :  { %38 = dma.vmem_to_hbm [thread:$0]  %s36_s15, 32, %s106_s2, [#allocation3]  }
  0x83   :  { %67 = dma.done.wait [#allocation3], 32  }
  0x84   :  { %68 = vsyncadd [#allocation3], 4294967264 }
  0x85   :  { %42 = vsyncpa [#allocation3], 1 }

</bundles_post_ra>
